<compile_context>
chip_gen: v7x
topology: tpu7x:2x2x1
jax: 0.10.0
libtpu: 0.0.40
codegen_flags: <defaults>
</compile_context>

<pallas_src>
import math
import jax
import jax.numpy as jnp
from jax import lax
from jax.experimental import pallas as pl
from jax.experimental.pallas import tpu as pltpu

# ---- model hyper-params (small, consistent with the module's structure) ----
B = 2          # batch
S = 8          # sequence length
D = 32         # embedding_dim
H = 4          # num_heads
HD = D // H    # head dim
MLP = 64       # mlp_size
EPS = 1e-5     # nn.LayerNorm default eps
BS = B * S
SCALE = 1.0 / math.sqrt(HD)
LANES = 128

# ---- packed parameter-slab layout (row offsets; all multiples of 8) ----
R_WQKV = 0            # (D, 3D)   rows   0..31, lanes 0..95
R_WO   = R_WQKV + D   # (D, D)    rows  32..63, lanes 0..31
R_W1   = R_WO + D     # (D, MLP)  rows  64..95, lanes 0..63
R_W2   = R_W1 + D     # (MLP, D)  rows  96..159, lanes 0..31
R_VEC  = R_W2 + MLP   # (8, 128)  rows 160..167: packed LN/bias vectors
SLAB_ROWS = R_VEC + 8

# rows inside the packed-vector block
ROW_LN1W, ROW_LN1B, ROW_BO, ROW_LN2W, ROW_LN2B, ROW_B2, ROW_BQKV, ROW_B1 = range(8)


def _layernorm(v, w, b):
    mu = jnp.mean(v, axis=-1, keepdims=True)
    var = jnp.mean((v - mu) ** 2, axis=-1, keepdims=True)
    return (v - mu) * lax.rsqrt(var + EPS) * w + b


def encoder_kernel(x_ref, slab_ref, o_ref):
    x = x_ref[...]                                     # (BS, D) both batches, flattened

    # ----- static slices of the single packed parameter slab (views, 1 DMA) -----
    wqkv_t = slab_ref[R_WQKV:R_WQKV + D, :3 * D]       # (D, 3D)
    wo_t   = slab_ref[R_WO:R_WO + D, :D]               # (D, D)
    w1_t   = slab_ref[R_W1:R_W1 + D, :MLP]             # (D, MLP)
    w2_t   = slab_ref[R_W2:R_W2 + MLP, :D]             # (MLP, D)
    vecs   = slab_ref[R_VEC:R_VEC + 8, :]              # (8, 128)

    ln1w = vecs[ROW_LN1W:ROW_LN1W + 1, :D]
    ln1b = vecs[ROW_LN1B:ROW_LN1B + 1, :D]
    bo   = vecs[ROW_BO:ROW_BO + 1, :D]
    ln2w = vecs[ROW_LN2W:ROW_LN2W + 1, :D]
    ln2b = vecs[ROW_LN2B:ROW_LN2B + 1, :D]
    b2   = vecs[ROW_B2:ROW_B2 + 1, :D]
    bqkv = vecs[ROW_BQKV:ROW_BQKV + 1, :3 * D]
    b1   = vecs[ROW_B1:ROW_B1 + 1, :MLP]

    # ----- MSA block: LayerNorm -> QKV projection -> fused attention -> out-proj -----
    ln1 = _layernorm(x, ln1w, ln1b)
    qkv = jnp.dot(ln1, wqkv_t,
                  preferred_element_type=jnp.float32) + bqkv             # (BS, 3D)

    def heads(t):  # (BS, D) head-major lane blocks -> (H*B, S, HD) batched tensor
        return jnp.stack([t[:, h * HD:(h + 1) * HD] for h in range(H)],
                         axis=0).reshape(H * B, S, HD)

    qh = heads(qkv[:, :D])
    kh = heads(qkv[:, D:2 * D])
    vh = heads(qkv[:, 2 * D:])

    s = jnp.einsum('bqd,bkd->bqk', qh, kh,
                   preferred_element_type=jnp.float32) * SCALE           # (H*B, S, S)
    s = s - jnp.max(s, axis=-1, keepdims=True)
    p = jnp.exp(s)
    # approx reciprocal: rows sum to 1 only within ~1e-3 (inference-grade).
    p = p * pl.reciprocal(jnp.sum(p, axis=-1, keepdims=True), approx=True)
    oh = jnp.einsum('bqk,bkd->bqd', p, vh,
                    preferred_element_type=jnp.float32)                  # (H*B, S, HD)

    oh = oh.reshape(H, BS, HD)                                           # head-major
    attn_cat = jnp.concatenate([oh[h] for h in range(H)], axis=-1)       # (BS, D)
    attn_out = jnp.dot(attn_cat, wo_t, preferred_element_type=jnp.float32)

    x1 = attn_out + bo + x                                               # residual 1

    # ----- MLP block: LayerNorm -> Linear -> GELU (exact erf) -> Linear -----
    ln2 = _layernorm(x1, ln2w, ln2b)
    h1 = jnp.dot(ln2, w1_t, preferred_element_type=jnp.float32) + b1     # (BS, MLP)
    g = 0.5 * h1 * (1.0 + lax.erf(h1 * 0.7071067811865476))
    y = jnp.dot(g, w2_t, preferred_element_type=jnp.float32) + b2        # (BS, D)

    o_ref[...] = x1 + y                                                  # residual 2


def transformer_encoder_block(x, params):
    (ln1w, ln1b, wqkv, bqkv, wo, bo, ln2w, ln2b, w1, b1, w2, b2) = params

    # --- one-time host-side layout plumbing: single packed parameter slab ---
    def pad_cols(m):
        return jnp.pad(m, ((0, 0), (0, LANES - m.shape[1])))

    def pad_row(v):
        v = v.reshape(-1)
        return jnp.pad(v, (0, LANES - v.shape[0]))

    vec_block = jnp.stack([pad_row(ln1w), pad_row(ln1b), pad_row(bo),
                           pad_row(ln2w), pad_row(ln2b), pad_row(b2),
                           pad_row(bqkv), pad_row(b1)])                  # (8, 128)

    slab = jnp.concatenate([pad_cols(wqkv.T),    # (D, 3D) -> rows 0..31
                            pad_cols(wo.T),      # (D, D)  -> rows 32..63
                            pad_cols(w1.T),      # (D, MLP)-> rows 64..95
                            pad_cols(w2.T),      # (MLP, D)-> rows 96..159
                            vec_block],          # (8,128) -> rows 160..167
                           axis=0)                                       # (168, 128)
    assert slab.shape == (SLAB_ROWS, LANES)

    x2d = x.reshape(BS, D)

    out2d = pl.pallas_call(
        encoder_kernel,
        out_shape=jax.ShapeDtypeStruct((BS, D), jnp.float32),
        in_specs=[
            pl.BlockSpec(memory_space=pltpu.MemorySpace.VMEM),   # activations
            pl.BlockSpec(memory_space=pltpu.MemorySpace.VMEM),   # packed params
        ],
        out_specs=pl.BlockSpec(memory_space=pltpu.MemorySpace.VMEM),
    )(x2d, slab)
    return out2d.reshape(B, S, D)


def reference_forward(x, params):
    (ln1w, ln1b, wqkv, bqkv, wo, bo, ln2w, ln2b, w1, b1, w2, b2) = params

    def ln(v, w, b):
        mu = jnp.mean(v, -1, keepdims=True)
        var = jnp.mean((v - mu) ** 2, -1, keepdims=True)
        return (v - mu) / jnp.sqrt(var + EPS) * w[0] + b[0]

    h = ln(x, ln1w, ln1b)
    qkv = h @ wqkv.T + bqkv[0]
    q, k, v = qkv[..., :D], qkv[..., D:2 * D], qkv[..., 2 * D:]

    def split(t):  # (B,S,D) -> (B,H,S,HD)
        return t.reshape(B, S, H, HD).transpose(0, 2, 1, 3)

    qh, kh, vh = split(q), split(k), split(v)
    s = jnp.einsum("bhsd,bhtd->bhst", qh, kh) / math.sqrt(HD)
    p = jax.nn.softmax(s, axis=-1)
    a = jnp.einsum("bhst,bhtd->bhsd", p, vh).transpose(0, 2, 1, 3).reshape(B, S, D)
    x1 = a @ wo.T + bo[0] + x

    h2 = ln(x1, ln2w, ln2b)
    u = h2 @ w1.T + b1[0]
    g = 0.5 * u * (1.0 + lax.erf(u * 0.7071067811865476))
    return x1 + g @ w2.T + b2[0]


def init_params(key):
    ks = jax.random.split(key, 12)
    std = 0.02
    ln1w = 1.0 + 0.1 * jax.random.normal(ks[0], (1, D), jnp.float32)
    ln1b = 0.1 * jax.random.normal(ks[1], (1, D), jnp.float32)
    wqkv = std * jax.random.normal(ks[2], (3 * D, D), jnp.float32)
    bqkv = std * jax.random.normal(ks[3], (1, 3 * D), jnp.float32)
    wo = std * jax.random.normal(ks[4], (D, D), jnp.float32)
    bo = std * jax.random.normal(ks[5], (1, D), jnp.float32)
    ln2w = 1.0 + 0.1 * jax.random.normal(ks[6], (1, D), jnp.float32)
    ln2b = 0.1 * jax.random.normal(ks[7], (1, D), jnp.float32)
    w1 = std * jax.random.normal(ks[8], (MLP, D), jnp.float32)
    b1 = std * jax.random.normal(ks[9], (1, MLP), jnp.float32)
    w2 = std * jax.random.normal(ks[10], (D, MLP), jnp.float32)
    b2 = std * jax.random.normal(ks[11], (1, D), jnp.float32)
    return (ln1w, ln1b, wqkv, bqkv, wo, bo, ln2w, ln2b, w1, b1, w2, b2)


if __name__ == "__main__":
    key = jax.random.PRNGKey(0)
    kx, kp = jax.random.split(key)
    x = jax.random.normal(kx, (B, S, D), jnp.float32)
    params = init_params(kp)

    out = transformer_encoder_block(x, params)
    out = jax.block_until_ready(out)

    ref = reference_forward(x, params)
    assert out.shape == (B, S, D)
    # tolerance slightly relaxed vs f32-exact to cover pl.reciprocal(approx=True)
    assert jnp.allclose(out, ref, rtol=2e-3, atol=2e-4), "mismatch vs reference"
    print("KERNEL_OK")
</pallas_src>

<mosaic_0001>
module attributes {stable_mosaic.version = 11 : i64} {
  func.func @encoder_kernel(%arg0: memref<16x32xf32, #tpu.memory_space<vmem>>, %arg1: memref<168x128xf32, #tpu.memory_space<vmem>>, %arg2: memref<16x32xf32, #tpu.memory_space<vmem>>) attributes {dimension_semantics = [], scalar_prefetch = 0 : i64, scratch_operands = 0 : i64, tpu.core_type = #tpu.core_type<tc>} {
    %c0 = arith.constant 0 : index
    %c0_0 = arith.constant 0 : index
    %0 = vector.load %arg0[%c0, %c0_0] : memref<16x32xf32, #tpu.memory_space<vmem>>, vector<16x32xf32>
    %c0_1 = arith.constant 0 : index
    %c0_2 = arith.constant 0 : index
    %1 = vector.load %arg1[%c0_1, %c0_2] : memref<168x128xf32, #tpu.memory_space<vmem>>, vector<32x96xf32>
    %c32 = arith.constant 32 : index
    %c0_3 = arith.constant 0 : index
    %2 = vector.load %arg1[%c32, %c0_3] : memref<168x128xf32, #tpu.memory_space<vmem>>, vector<32x32xf32>
    %c64 = arith.constant 64 : index
    %c0_4 = arith.constant 0 : index
    %3 = vector.load %arg1[%c64, %c0_4] : memref<168x128xf32, #tpu.memory_space<vmem>>, vector<32x64xf32>
    %c96 = arith.constant 96 : index
    %c0_5 = arith.constant 0 : index
    %4 = vector.load %arg1[%c96, %c0_5] : memref<168x128xf32, #tpu.memory_space<vmem>>, vector<64x32xf32>
    %c160 = arith.constant 160 : index
    %c0_6 = arith.constant 0 : index
    %5 = vector.load %arg1[%c160, %c0_6] : memref<168x128xf32, #tpu.memory_space<vmem>>, vector<8x128xf32>
    %6 = vector.extract_strided_slice %5 {offsets = [0, 0], sizes = [1, 32], strides = [1, 1]} : vector<8x128xf32> to vector<1x32xf32>
    %7 = vector.extract_strided_slice %5 {offsets = [1, 0], sizes = [1, 32], strides = [1, 1]} : vector<8x128xf32> to vector<1x32xf32>
    %8 = vector.extract_strided_slice %5 {offsets = [2, 0], sizes = [1, 32], strides = [1, 1]} : vector<8x128xf32> to vector<1x32xf32>
    %9 = vector.extract_strided_slice %5 {offsets = [3, 0], sizes = [1, 32], strides = [1, 1]} : vector<8x128xf32> to vector<1x32xf32>
    %10 = vector.extract_strided_slice %5 {offsets = [4, 0], sizes = [1, 32], strides = [1, 1]} : vector<8x128xf32> to vector<1x32xf32>
    %11 = vector.extract_strided_slice %5 {offsets = [5, 0], sizes = [1, 32], strides = [1, 1]} : vector<8x128xf32> to vector<1x32xf32>
    %12 = vector.extract_strided_slice %5 {offsets = [6, 0], sizes = [1, 96], strides = [1, 1]} : vector<8x128xf32> to vector<1x96xf32>
    %13 = vector.extract_strided_slice %5 {offsets = [7, 0], sizes = [1, 64], strides = [1, 1]} : vector<8x128xf32> to vector<1x64xf32>
    %cst = arith.constant dense<0.000000e+00> : vector<16xf32>
    %14 = vector.multi_reduction <add>, %0, %cst [1] : vector<16x32xf32> to vector<16xf32>
    %15 = vector.shape_cast %14 : vector<16xf32> to vector<16x1xf32>
    %cst_7 = arith.constant 3.200000e+01 : f32
    %16 = vector.broadcast %cst_7 : f32 to vector<16x1xf32>
    %17 = arith.divf %15, %16 : vector<16x1xf32>
    %18 = vector.broadcast %17 : vector<16x1xf32> to vector<16x32xf32>
    %19 = arith.subf %0, %18 : vector<16x32xf32>
    %20 = arith.mulf %19, %19 : vector<16x32xf32>
    %cst_8 = arith.constant dense<0.000000e+00> : vector<16xf32>
    %21 = vector.multi_reduction <add>, %20, %cst_8 [1] : vector<16x32xf32> to vector<16xf32>
    %22 = vector.shape_cast %21 : vector<16xf32> to vector<16x1xf32>
    %cst_9 = arith.constant 3.200000e+01 : f32
    %23 = vector.broadcast %cst_9 : f32 to vector<16x1xf32>
    %24 = arith.divf %22, %23 : vector<16x1xf32>
    %25 = vector.broadcast %17 : vector<16x1xf32> to vector<16x32xf32>
    %26 = arith.subf %0, %25 : vector<16x32xf32>
    %cst_10 = arith.constant 9.99999974E-6 : f32
    %27 = vector.broadcast %cst_10 : f32 to vector<16x1xf32>
    %28 = arith.addf %24, %27 : vector<16x1xf32>
    %29 = math.rsqrt %28 : vector<16x1xf32>
    %30 = vector.broadcast %29 : vector<16x1xf32> to vector<16x32xf32>
    %31 = arith.mulf %26, %30 : vector<16x32xf32>
    %32 = vector.broadcast %6 : vector<1x32xf32> to vector<16x32xf32>
    %33 = arith.mulf %31, %32 : vector<16x32xf32>
    %34 = vector.broadcast %7 : vector<1x32xf32> to vector<16x32xf32>
    %35 = arith.addf %33, %34 : vector<16x32xf32>
    %cst_11 = arith.constant dense<0.000000e+00> : vector<16x96xf32>
    %36 = tpu.matmul %35, %1, %cst_11 {dimension_numbers = #tpu.dot_dimension_numbers<[1], [0], [0], [1], [0, 0, 1, 1], [], []>} : vector<16x32xf32>, vector<32x96xf32>, vector<16x96xf32> -> vector<16x96xf32>
    %37 = vector.broadcast %12 : vector<1x96xf32> to vector<16x96xf32>
    %38 = arith.addf %36, %37 : vector<16x96xf32>
    %39 = vector.extract_strided_slice %38 {offsets = [0, 0], sizes = [16, 32], strides = [1, 1]} : vector<16x96xf32> to vector<16x32xf32>
    %40 = vector.extract_strided_slice %39 {offsets = [0, 0], sizes = [16, 8], strides = [1, 1]} : vector<16x32xf32> to vector<16x8xf32>
    %41 = vector.extract_strided_slice %39 {offsets = [0, 8], sizes = [16, 8], strides = [1, 1]} : vector<16x32xf32> to vector<16x8xf32>
    %42 = vector.extract_strided_slice %39 {offsets = [0, 16], sizes = [16, 8], strides = [1, 1]} : vector<16x32xf32> to vector<16x8xf32>
    %43 = vector.extract_strided_slice %39 {offsets = [0, 24], sizes = [16, 8], strides = [1, 1]} : vector<16x32xf32> to vector<16x8xf32>
    %44 = vector.shape_cast %40 : vector<16x8xf32> to vector<1x16x8xf32>
    %45 = vector.shape_cast %41 : vector<16x8xf32> to vector<1x16x8xf32>
    %46 = vector.shape_cast %42 : vector<16x8xf32> to vector<1x16x8xf32>
    %47 = vector.shape_cast %43 : vector<16x8xf32> to vector<1x16x8xf32>
    %48 = tpu.concatenate %44, %45, %46, %47 in 0 : vector<1x16x8xf32>, vector<1x16x8xf32>, vector<1x16x8xf32>, vector<1x16x8xf32> -> vector<4x16x8xf32>
    %49 = vector.shape_cast %48 : vector<4x16x8xf32> to vector<8x8x8xf32>
    %50 = vector.extract_strided_slice %38 {offsets = [0, 32], sizes = [16, 32], strides = [1, 1]} : vector<16x96xf32> to vector<16x32xf32>
    %51 = vector.extract_strided_slice %50 {offsets = [0, 0], sizes = [16, 8], strides = [1, 1]} : vector<16x32xf32> to vector<16x8xf32>
    %52 = vector.extract_strided_slice %50 {offsets = [0, 8], sizes = [16, 8], strides = [1, 1]} : vector<16x32xf32> to vector<16x8xf32>
    %53 = vector.extract_strided_slice %50 {offsets = [0, 16], sizes = [16, 8], strides = [1, 1]} : vector<16x32xf32> to vector<16x8xf32>
    %54 = vector.extract_strided_slice %50 {offsets = [0, 24], sizes = [16, 8], strides = [1, 1]} : vector<16x32xf32> to vector<16x8xf32>
    %55 = vector.shape_cast %51 : vector<16x8xf32> to vector<1x16x8xf32>
    %56 = vector.shape_cast %52 : vector<16x8xf32> to vector<1x16x8xf32>
    %57 = vector.shape_cast %53 : vector<16x8xf32> to vector<1x16x8xf32>
    %58 = vector.shape_cast %54 : vector<16x8xf32> to vector<1x16x8xf32>
    %59 = tpu.concatenate %55, %56, %57, %58 in 0 : vector<1x16x8xf32>, vector<1x16x8xf32>, vector<1x16x8xf32>, vector<1x16x8xf32> -> vector<4x16x8xf32>
    %60 = vector.shape_cast %59 : vector<4x16x8xf32> to vector<8x8x8xf32>
    %61 = vector.extract_strided_slice %38 {offsets = [0, 64], sizes = [16, 32], strides = [1, 1]} : vector<16x96xf32> to vector<16x32xf32>
    %62 = vector.extract_strided_slice %61 {offsets = [0, 0], sizes = [16, 8], strides = [1, 1]} : vector<16x32xf32> to vector<16x8xf32>
    %63 = vector.extract_strided_slice %61 {offsets = [0, 8], sizes = [16, 8], strides = [1, 1]} : vector<16x32xf32> to vector<16x8xf32>
    %64 = vector.extract_strided_slice %61 {offsets = [0, 16], sizes = [16, 8], strides = [1, 1]} : vector<16x32xf32> to vector<16x8xf32>
    %65 = vector.extract_strided_slice %61 {offsets = [0, 24], sizes = [16, 8], strides = [1, 1]} : vector<16x32xf32> to vector<16x8xf32>
    %66 = vector.shape_cast %62 : vector<16x8xf32> to vector<1x16x8xf32>
    %67 = vector.shape_cast %63 : vector<16x8xf32> to vector<1x16x8xf32>
    %68 = vector.shape_cast %64 : vector<16x8xf32> to vector<1x16x8xf32>
    %69 = vector.shape_cast %65 : vector<16x8xf32> to vector<1x16x8xf32>
    %70 = tpu.concatenate %66, %67, %68, %69 in 0 : vector<1x16x8xf32>, vector<1x16x8xf32>, vector<1x16x8xf32>, vector<1x16x8xf32> -> vector<4x16x8xf32>
    %71 = vector.shape_cast %70 : vector<4x16x8xf32> to vector<8x8x8xf32>
    "tpu.trace_start"() <{level = 10 : i32, message = "bqd,bkd->bqk"}> : () -> ()
    %cst_12 = arith.constant dense<0.000000e+00> : vector<8x8x8xf32>
    %72 = tpu.matmul %49, %60, %cst_12 {dimension_numbers = #tpu.dot_dimension_numbers<[2], [2], [1], [1], [0, 0, 0, 1, 1, 1], [0], [0]>} : vector<8x8x8xf32>, vector<8x8x8xf32>, vector<8x8x8xf32> -> vector<8x8x8xf32>
    "tpu.trace_stop"() : () -> ()
    %cst_13 = arith.constant 0.353553385 : f32
    %73 = vector.broadcast %cst_13 : f32 to vector<8x8x8xf32>
    %74 = arith.mulf %72, %73 : vector<8x8x8xf32>
    %cst_14 = arith.constant dense<0xFF800000> : vector<8x8xf32>
    %75 = vector.multi_reduction <maximumf>, %74, %cst_14 [2] : vector<8x8x8xf32> to vector<8x8xf32>
    %76 = vector.shape_cast %75 : vector<8x8xf32> to vector<8x8x1xf32>
    %77 = vector.broadcast %76 : vector<8x8x1xf32> to vector<8x8x8xf32>
    %78 = arith.subf %74, %77 : vector<8x8x8xf32>
    %79 = math.exp %78 : vector<8x8x8xf32>
    %cst_15 = arith.constant dense<0.000000e+00> : vector<8x8xf32>
    %80 = vector.multi_reduction <add>, %79, %cst_15 [2] : vector<8x8x8xf32> to vector<8x8xf32>
    %81 = vector.shape_cast %80 : vector<8x8xf32> to vector<8x8x1xf32>
    %82 = tpu.reciprocal %81 {approx = true} : vector<8x8x1xf32> -> vector<8x8x1xf32>
    %83 = vector.broadcast %82 : vector<8x8x1xf32> to vector<8x8x8xf32>
    %84 = arith.mulf %79, %83 : vector<8x8x8xf32>
    "tpu.trace_start"() <{level = 10 : i32, message = "bqk,bkd->bqd"}> : () -> ()
    %cst_16 = arith.constant dense<0.000000e+00> : vector<8x8x8xf32>
    %85 = tpu.matmul %84, %71, %cst_16 {dimension_numbers = #tpu.dot_dimension_numbers<[2], [1], [1], [2], [0, 0, 0, 1, 1, 2], [0], [0]>} : vector<8x8x8xf32>, vector<8x8x8xf32>, vector<8x8x8xf32> -> vector<8x8x8xf32>
    "tpu.trace_stop"() : () -> ()
    %86 = vector.shape_cast %85 : vector<8x8x8xf32> to vector<4x16x8xf32>
    %87 = vector.extract_strided_slice %86 {offsets = [0, 0, 0], sizes = [1, 16, 8], strides = [1, 1, 1]} : vector<4x16x8xf32> to vector<1x16x8xf32>
    %88 = vector.shape_cast %87 : vector<1x16x8xf32> to vector<16x8xf32>
    %89 = vector.extract_strided_slice %86 {offsets = [1, 0, 0], sizes = [1, 16, 8], strides = [1, 1, 1]} : vector<4x16x8xf32> to vector<1x16x8xf32>
    %90 = vector.shape_cast %89 : vector<1x16x8xf32> to vector<16x8xf32>
    %91 = vector.extract_strided_slice %86 {offsets = [2, 0, 0], sizes = [1, 16, 8], strides = [1, 1, 1]} : vector<4x16x8xf32> to vector<1x16x8xf32>
    %92 = vector.shape_cast %91 : vector<1x16x8xf32> to vector<16x8xf32>
    %93 = vector.extract_strided_slice %86 {offsets = [3, 0, 0], sizes = [1, 16, 8], strides = [1, 1, 1]} : vector<4x16x8xf32> to vector<1x16x8xf32>
    %94 = vector.shape_cast %93 : vector<1x16x8xf32> to vector<16x8xf32>
    %95 = tpu.concatenate %88, %90, %92, %94 in 1 : vector<16x8xf32>, vector<16x8xf32>, vector<16x8xf32>, vector<16x8xf32> -> vector<16x32xf32>
    %cst_17 = arith.constant dense<0.000000e+00> : vector<16x32xf32>
    %96 = tpu.matmul %95, %2, %cst_17 {dimension_numbers = #tpu.dot_dimension_numbers<[1], [0], [0], [1], [0, 0, 1, 1], [], []>} : vector<16x32xf32>, vector<32x32xf32>, vector<16x32xf32> -> vector<16x32xf32>
    %97 = vector.broadcast %8 : vector<1x32xf32> to vector<16x32xf32>
    %98 = arith.addf %96, %97 : vector<16x32xf32>
    %99 = arith.addf %98, %0 : vector<16x32xf32>
    %cst_18 = arith.constant dense<0.000000e+00> : vector<16xf32>
    %100 = vector.multi_reduction <add>, %99, %cst_18 [1] : vector<16x32xf32> to vector<16xf32>
    %101 = vector.shape_cast %100 : vector<16xf32> to vector<16x1xf32>
    %cst_19 = arith.constant 3.200000e+01 : f32
    %102 = vector.broadcast %cst_19 : f32 to vector<16x1xf32>
    %103 = arith.divf %101, %102 : vector<16x1xf32>
    %104 = vector.broadcast %103 : vector<16x1xf32> to vector<16x32xf32>
    %105 = arith.subf %99, %104 : vector<16x32xf32>
    %106 = arith.mulf %105, %105 : vector<16x32xf32>
    %cst_20 = arith.constant dense<0.000000e+00> : vector<16xf32>
    %107 = vector.multi_reduction <add>, %106, %cst_20 [1] : vector<16x32xf32> to vector<16xf32>
    %108 = vector.shape_cast %107 : vector<16xf32> to vector<16x1xf32>
    %cst_21 = arith.constant 3.200000e+01 : f32
    %109 = vector.broadcast %cst_21 : f32 to vector<16x1xf32>
    %110 = arith.divf %108, %109 : vector<16x1xf32>
    %111 = vector.broadcast %103 : vector<16x1xf32> to vector<16x32xf32>
    %112 = arith.subf %99, %111 : vector<16x32xf32>
    %cst_22 = arith.constant 9.99999974E-6 : f32
    %113 = vector.broadcast %cst_22 : f32 to vector<16x1xf32>
    %114 = arith.addf %110, %113 : vector<16x1xf32>
    %115 = math.rsqrt %114 : vector<16x1xf32>
    %116 = vector.broadcast %115 : vector<16x1xf32> to vector<16x32xf32>
    %117 = arith.mulf %112, %116 : vector<16x32xf32>
    %118 = vector.broadcast %9 : vector<1x32xf32> to vector<16x32xf32>
    %119 = arith.mulf %117, %118 : vector<16x32xf32>
    %120 = vector.broadcast %10 : vector<1x32xf32> to vector<16x32xf32>
    %121 = arith.addf %119, %120 : vector<16x32xf32>
    %cst_23 = arith.constant dense<0.000000e+00> : vector<16x64xf32>
    %122 = tpu.matmul %121, %3, %cst_23 {dimension_numbers = #tpu.dot_dimension_numbers<[1], [0], [0], [1], [0, 0, 1, 1], [], []>} : vector<16x32xf32>, vector<32x64xf32>, vector<16x64xf32> -> vector<16x64xf32>
    %123 = vector.broadcast %13 : vector<1x64xf32> to vector<16x64xf32>
    %124 = arith.addf %122, %123 : vector<16x64xf32>
    %cst_24 = arith.constant 5.000000e-01 : f32
    %125 = vector.broadcast %cst_24 : f32 to vector<16x64xf32>
    %126 = arith.mulf %125, %124 : vector<16x64xf32>
    %cst_25 = arith.constant 0.707106769 : f32
    %127 = vector.broadcast %cst_25 : f32 to vector<16x64xf32>
    %128 = arith.mulf %124, %127 : vector<16x64xf32>
    %129 = math.erf %128 : vector<16x64xf32>
    %cst_26 = arith.constant 1.000000e+00 : f32
    %130 = vector.broadcast %cst_26 : f32 to vector<16x64xf32>
    %131 = arith.addf %130, %129 : vector<16x64xf32>
    %132 = arith.mulf %126, %131 : vector<16x64xf32>
    %cst_27 = arith.constant dense<0.000000e+00> : vector<16x32xf32>
    %133 = tpu.matmul %132, %4, %cst_27 {dimension_numbers = #tpu.dot_dimension_numbers<[1], [0], [0], [1], [0, 0, 1, 1], [], []>} : vector<16x64xf32>, vector<64x32xf32>, vector<16x32xf32> -> vector<16x32xf32>
    %134 = vector.broadcast %11 : vector<1x32xf32> to vector<16x32xf32>
    %135 = arith.addf %133, %134 : vector<16x32xf32>
    %136 = arith.addf %99, %135 : vector<16x32xf32>
    %c0_28 = arith.constant 0 : index
    %c0_29 = arith.constant 0 : index
    %137 = vector.load %arg2[%c0_28, %c0_29] : memref<16x32xf32, #tpu.memory_space<vmem>>, vector<16x32xf32>
    tpu.vector_store %arg2[%c0_28, %c0_29], %136 {strides = array<i32>} : memref<16x32xf32, #tpu.memory_space<vmem>>, vector<16x32xf32>,
    return
  }
}

</mosaic_0001>

<bundles_post_ra>
// kernel: tpu_custom_call.1
= control target key start
LH: loop header
LB: loop body
LE: loop exit
PB: predicated region body
PF: predicated region fallthrough
CT: control target
= control target key end

     0   :  { %7 = vsyncpa [#allocation3], 0  ;;  %s2561_s0 = inlined_call_operand.hbm [shape: f32[16,32], index: 0, kind: input, shape index: {}]   ;;  %s2562_s1 = inlined_call_operand.hbm [shape: f32[168,128], index: 1, kind: input, shape index: {}]   ;;  %s2563_s2 = inlined_call_operand.hbm [shape: f32[16,32], index: 2, kind: output, shape index: {}]  }
   0x1   :  { %8 = vsyncpa [#allocation6], 0 }
   0x2   :  { %9 = vsyncpa [#allocation4], 0  ;;  %s2269_s9 = smov [#allocation2]   ;;  %s2197_s13 = scalar_lea.hbm %s2561_s0, 256 }
   0x3   :  { %s15_s10 = sshll.u32 %s2269_s9, 4  ;;  %p2198_p0 = scmp.ne.s32.totalorder %s2561_s0, %s2197_s13  ;;  %s16_s10 = int_to_ptr.vmem [resolvable:$true] %s15_s10 }
   0x4   :  { %p2201_p1 = scmp.lt.u32.totalorder %s2197_s13, %s2561_s0 }
   0x6   :  { %p2203_p2 = pnand %p2201_p1, %p2198_p0 }
   0x8   :  { %2206 = shalt.err (!%p2203_p2)
}
   0x9   :  { %s2207_s18 = scalar_lea.vmem %s16_s10, 256  ;;  %p2212_p4 = scmp.lt.s32.totalorder %s16_s10, %s16_s10 }
   0xa   :  { %p2208_p3 = scmp.ne.s32.totalorder %s16_s10, %s2207_s18  ;;  %p2213_p5 = scmp.lt.s32.totalorder %s2207_s18, %s2207_s18 }
   0xc   :  { %p2214_p6 = por %p2213_p5, %p2212_p4 }
   0xe   :  { %p2215_p7 = pnand %p2214_p6, %p2208_p3 }
  0x10   :  { %2218 = shalt.err (!%p2215_p7)
}
  0x11   :  { %s2270_s19 = smov 128   ;;  %s2271_s20 = smov 8  }
  0x12   :  { %21 = dma.hbm_to_vmem [thread:$0]  %s2561_s0, 256, %s16_s10, [#allocation3], %s2270_s19, %s2270_s19, %s2271_s20  }
  0x13   :  { %s2272_s23 = smov [#allocation5]   ;;  %s2219_s27 = scalar_lea.hbm %s2562_s1, 2688 }
  0x14   :  { %s27_s24 = sshll.u32 %s2272_s23, 4  ;;  %p2220_p8 = scmp.ne.s32.totalorder %s2562_s1, %s2219_s27  ;;  %s28_s24 = int_to_ptr.vmem [resolvable:$true] %s27_s24 }
  0x15   :  { %p2223_p9 = scmp.lt.u32.totalorder %s2219_s27, %s2562_s1 }
  0x17   :  { %p2225_p10 = pnand %p2223_p9, %p2220_p8 }
  0x19   :  { %2228 = shalt.err (!%p2225_p10)
}
  0x1a   :  { %s2229_s4 = scalar_lea.vmem %s28_s24, 2688  ;;  %p2234_p12 = scmp.lt.s32.totalorder %s28_s24, %s28_s24 }
  0x1b   :  { %p2230_p11 = scmp.ne.s32.totalorder %s28_s24, %s2229_s4  ;;  %p2235_p13 = scmp.lt.s32.totalorder %s2229_s4, %s2229_s4 }
  0x1d   :  { %p2236_p0 = por %p2235_p13, %p2234_p12 }
  0x1f   :  { %p2237_p1 = pnand %p2236_p0, %p2230_p11 }
  0x21   :  { %2240 = shalt.err (!%p2237_p1)
}
  0x22   :  { %33 = dma.hbm_to_vmem [thread:$0]  %s2562_s1, 2688, %s28_s24, [#allocation6], %s2270_s19, %s2270_s19, %s2271_s20  }
  0x23   :  { %2263 = dma.done.wait [#allocation3], 256  }
  0x24   :  { %2264 = vsyncadd [#allocation3], 4294967040 }
  0x25   :  { %2265 = dma.done.wait [#allocation6], 2688  }
  0x26   :  { %2266 = vsyncadd [#allocation6], 4294964608  ;;  %vm63_vm0 = vcmask 261120   ;;  %v2328_v0 = vld [vmem:[#allocation2] sm:$0xff]  ;;  %v2330_v1 = vld [vmem:[#allocation2 + $0x8] sm:$0xff]  ;;  %v91_v22 = vlaneseq  ;;  %v2273_v43 = vmov 0.0  }
  0x27   :  { %v64_v2 = vsel %vm63_vm0, %v2328_v0, 0.0  ;;  %v67_v3 = vsel %vm63_vm0, %v2330_v1, 0.0  ;;  %v42_v14 = vld [vmem:[#allocation5] sm:$0xff]  ;;  %v43_v15 = vld [vmem:[#allocation5 + $0x8] sm:$0xff]  ;;  %v44_v16 = vld [vmem:[#allocation5 + $0x10] sm:$0xff]  ;;  %1988 = vmatprep.subr.mxu0 %v2273_v43  ;;  %vm2274_vm1 = vmmov 0  }
  0x28   :  { %65 = vadd.xlane.f32.xlu0 %v64_v2  ;;  %v2099_v17 = vpack.c.bf16 %v43_v15, %v42_v14  ;;  %v45_v18 = vld [vmem:[#allocation5 + $0x18] sm:$0xff]  ;;  %v2340_v26 = vshrl.u32 %v91_v22, 7  ;;  %v2343_v29 = vld [vmem:[#allocation5 + $0xa0] sm:$0xff]  ;;  %1990 = vmatprep.mubr.msk.f32.mxu0 %vm2274_vm1, %v2273_v43  ;;  %s2275_s1 = smov 120   ;;  %s2276_s6 = smov 112   ;;  %vm204_vm2 = vcmask 64512  }
  0x29   :  { %v2103_v19 = vpack.c.bf16 %v45_v18, %v44_v16  ;;  %s2277_s7 = smov 104   ;;  %s2278_s8 = smov 96   ;;  %vm1541_vm3 = vcmask 130048   ;;  %vm1544_vm4 = vcmask 195584   ;;  %vm1771_vm5 = vcmask 523264  }
  0x2a   :  { %2100 = vmatprep.subr.bf16.mxu1 %v2099_v17  ;;  %v93_v28 = vsub.s32 0, %v2340_v26  ;;  %v99_v30 = vsub.s32 1, %v2340_v26  ;;  %v105_v41 = vsub.s32 6, %v2340_v26  ;;  %s2279_s9 = smov 64   ;;  %s2280_s10 = smov 16  }
  0x2b   :  { %2102 = vmatpush3.bf16.msra.mxu1 %v2099_v17  ;;  %s2281_s11 = smov 24   ;;  %s2282_s12 = smov [#allocation7]  }
  0x2c   :  { %68 = vadd.xlane.f32.xlu0 %v67_v3  ;;  %2104 = vmatprep.subr.bf16.mxu1 %v2103_v19  ;;  %v94_v31 = vrot.slane %v2343_v29, %v93_v28  ;;  %v100_v34 = vrot.slane %v2343_v29, %v99_v30  ;;  %v106_v42 = vrot.slane %v2343_v29, %v105_v41  ;;  %s1862_s13 = sshll.u32 %s2282_s12, 4  ;;  %s1863_s13 = int_to_ptr.vmem [resolvable:$true] %s1862_s13 }
  0x2d   :  { %s2241_s14 = scalar_lea.vmem %s1863_s13, 256  ;;  %p2246_p3 = scmp.lt.s32.totalorder %s1863_s13, %s1863_s13 }
  0x2e   :  { %p2242_p2 = scmp.ne.s32.totalorder %s1863_s13, %s2241_s14  ;;  %p2247_p4 = scmp.lt.s32.totalorder %s2241_s14, %s2241_s14 }
  0x2f   :  { %2106 = vmatpush3.bf16.msra.mxu1 %v2103_v19 }
  0x30   :  { %1978 = vmatprep.subr.mxu1 %v2273_v43  ;;  %p2248_p5 = por %p2247_p4, %p2246_p3 }
  0x32   :  { %p2249_p6 = pnand %p2248_p5, %p2242_p2 }
  0xb5   :  { %v66_v4 = vpop.xlane.xlu0 %65 }
  0xb6   :  { %v71_v5 = vmul.f32 0.03125, %v66_v4 }
  0xb8   :  { %v73_v6 = vsub.f32 %v2328_v0, %v71_v5 }
  0xb9   :  { %v69_v7 = vpop.xlane.xlu0 %68 }
  0xba   :  { %v72_v8 = vmul.f32 0.03125, %v69_v7  ;;  %v75_v9 = vmul.f32 %v73_v6, %v73_v6 }
  0xbc   :  { %v74_v10 = vsub.f32 %v2330_v1, %v72_v8  ;;  %v77_v11 = vsel %vm63_vm0, %v75_v9, 0.0 }
  0xbd   :  { %78 = vadd.xlane.f32.xlu1 %v77_v11 }
  0xbe   :  { %v76_v12 = vmul.f32 %v74_v10, %v74_v10 }
  0xc0   :  { %v80_v13 = vsel %vm63_vm0, %v76_v12, 0.0 }
  0xc1   :  { %81 = vadd.xlane.f32.xlu1 %v80_v13 }
 0x14a   :  { %v79_v20 = vpop.xlane.xlu1 %78 }
 0x14b   :  { %v83_v21 = vmul.f32 0.03125, %v79_v20 }
 0x14d   :  { %v85_v23 = vadd.f32 1e-05, %v83_v21 }
 0x14e   :  { %v82_v24 = vpop.xlane.xlu1 %81 }
 0x14f   :  { %2153 = vrsqrt.f32 %v85_v23  ;;  %v84_v25 = vmul.f32 0.03125, %v82_v24 }
 0x151   :  { %v86_v27 = vadd.f32 1e-05, %v84_v25 }
 0x153   :  { %2155 = vrsqrt.f32 %v86_v27 }
 0x159   :  { %v2154_v32 = vpop.eup %2153 }
 0x15a   :  { %v89_v33 = vmul.f32 %v2154_v32, %v73_v6 }
 0x15c   :  { %v95_v35 = vmul.f32 %v94_v31, %v89_v33 }
 0x15d   :  { %v2156_v36 = vpop.eup %2155 }
 0x15e   :  { %v90_v37 = vmul.f32 %v2156_v36, %v74_v10  ;;  %v101_v38 = vadd.f32 %v100_v34, %v95_v35 }
 0x160   :  { %v96_v39 = vmul.f32 %v94_v31, %v90_v37  ;;  %1975 = vmatprep.mubr.msk.f32.mxu1 %vm63_vm0, %v101_v38 }
 0x162   :  { %v102_v40 = vadd.f32 %v100_v34, %v96_v39 }
 0x164   :  { %1976 = vmatmul.mubr.msk.f32.vlgmr.msra.gmra.mrb[0].mxu1 %vm63_vm0, %v102_v40 }
 0x165   :  { %1980 = vmatprep.mubr.msk.f32.mxu1 %vm2274_vm1, %v2273_v43 }
 0x237   :  { %v1977_v44 = vpop.f32.mrb[0].mxu1 }
 0x238   :  { %v2358_v45 = vadd.f32 %v1977_v44, %v106_v42  ;;  %v179_v46 = vpop.f32.mrb[1].mxu1 }
 0x239   :  { %v2360_v47 = vadd.f32 %v179_v46, %v106_v42 }
 0x23a   :  { %192 = vrot.lane.b32.xlu1 %v2358_v45, %s2275_s1 }
 0x23b   :  { %190 = vrot.lane.b32.xlu0 %v2360_v47, %s2275_s1 }
 0x23e   :  { %194 = vrot.lane.b32.xlu1 %v2360_v47, %s2276_s6 }
 0x23f   :  { %198 = vrot.lane.b32.xlu0 %v2360_v47, %s2277_s7 }
 0x242   :  { %196 = vrot.lane.b32.xlu1 %v2358_v45, %s2276_s6 }
 0x243   :  { %202 = vrot.lane.b32.xlu0 %v2360_v47, %s2278_s8 }
 0x246   :  { %200 = vrot.lane.b32.xlu1 %v2358_v45, %s2277_s7 }
 0x24a   :  { %279 = vrot.lane.b32.xlu1 %v2358_v45, %s2278_s8 }
 0x2ac   :  { %v2370_v48 = vpop.permute.xlu1 %192 }
 0x2ad   :  { %431 = vrot.lane.b32.xlu1 %v2370_v48, %s2278_s8  ;;  %v2373_v49 = vpop.permute.xlu0 %190 }
 0x2ae   :  { %355 = vrot.lane.b32.xlu0 %v2373_v49, %s2278_s8 }
 0x2b0   :  { %v2376_v50 = vpop.permute.xlu1 %194 }
 0x2b1   :  { %v2378_v51 = vpop.permute.xlu0 %198 }
 0x2b2   :  { %507 = vrot.lane.b32.xlu0 %v2376_v50, %s2278_s8 }
 0x2b4   :  { %v2381_v52 = vpop.permute.xlu1 %196 }
 0x2b5   :  { %583 = vrot.lane.b32.xlu1 %v2381_v52, %s2278_s8  ;;  %v203_v53 = vpop.permute.xlu0 %202 }
 0x2b6   :  { %659 = vrot.lane.b32.xlu0 %v2378_v51, %s2278_s8  ;;  %1979 = vmatpush3.xpose.msk.msra.mxu1 %vm204_vm2, %v203_v53 }
 0x2b7   :  { %1983 = vmatprep.subr.mxu1 %v2273_v43 }
 0x2b8   :  { %v2387_v54 = vpop.permute.xlu1 %200 }
 0x2b9   :  { %735 = vrot.lane.b32.xlu1 %v2387_v54, %s2278_s8  ;;  %1981 = vmatmul.mubr.msk.f32.vlgmr.msra.gmra.mrb[2].mxu1 %vm204_vm2, %v2360_v47 }
 0x2ba   :  { %1985 = vmatprep.mubr.msk.f32.mxu1 %vm2274_vm1, %v2273_v43 }
 0x2bc   :  { %v280_v55 = vpop.permute.xlu1 %279 }
 0x2bd   :  { %1984 = vmatpush3.xpose.msk.msra.mxu1 %vm204_vm2, %v280_v55 }
 0x2be   :  { %1993 = vmatprep.subr.mxu1 %v2273_v43 }
 0x2c0   :  { %1986 = vmatmul.mubr.msk.f32.vlgmr.msra.gmra.mrb[4].mxu1 %vm204_vm2, %v2358_v45 }
 0x2c1   :  { %1995 = vmatprep.mubr.msk.f32.mxu1 %vm2274_vm1, %v2273_v43 }
 0x31f   :  { %v432_v56 = vpop.permute.xlu1 %431 }
 0x320   :  { %1994 = vmatpush3.xpose.msk.msra.mxu1 %vm204_vm2, %v432_v56  ;;  %v356_v57 = vpop.permute.xlu0 %355 }
 0x321   :  { %1989 = vmatpush3.xpose.msk.msra.mxu0 %vm204_vm2, %v356_v57  ;;  %2003 = vmatprep.subr.mxu1 %v2273_v43 }
 0x322   :  { %1998 = vmatprep.subr.mxu0 %v2273_v43 }
 0x323   :  { %1996 = vmatmul.mubr.msk.f32.vlgmr.msra.gmra.mrb[6].mxu1 %vm204_vm2, %v2370_v48 }
 0x324   :  { %1991 = vmatmul.mubr.msk.f32.vlgmr.msra.gmra.mrb[0].mxu0 %vm204_vm2, %v2373_v49  ;;  %v508_v58 = vpop.permute.xlu0 %507  ;;  %2005 = vmatprep.mubr.msk.f32.mxu1 %vm2274_vm1, %v2273_v43 }
 0x325   :  { %1999 = vmatpush3.xpose.msk.msra.mxu0 %vm204_vm2, %v508_v58  ;;  %2000 = vmatprep.mubr.msk.f32.mxu0 %vm2274_vm1, %v2273_v43 }
 0x326   :  { %2008 = vmatprep.subr.mxu0 %v2273_v43 }
 0x327   :  { %v584_v59 = vpop.permute.xlu1 %583 }
 0x328   :  { %2001 = vmatmul.mubr.msk.f32.vlgmr.msra.gmra.mrb[2].mxu0 %vm204_vm2, %v2376_v50  ;;  %2004 = vmatpush3.xpose.msk.msra.mxu1 %vm204_vm2, %v584_v59  ;;  %v660_v60 = vpop.permute.xlu0 %659 }
 0x329   :  { %2009 = vmatpush3.xpose.msk.msra.mxu0 %vm204_vm2, %v660_v60  ;;  %2010 = vmatprep.mubr.msk.f32.mxu0 %vm2274_vm1, %v2273_v43 }
 0x32a   :  { %2013 = vmatprep.subr.mxu1 %v2273_v43  ;;  %2018 = vmatprep.subr.mxu0 %v2273_v43 }
 0x32b   :  { %v736_v61 = vpop.permute.xlu1 %735  ;;  %2006 = vmatmul.mubr.msk.f32.vlgmr.msra.gmra.mrb[8].mxu1 %vm204_vm2, %v2381_v52 }
 0x32c   :  { %2011 = vmatmul.mubr.msk.f32.vlgmr.msra.gmra.mrb[4].mxu0 %vm204_vm2, %v2378_v51  ;;  %2014 = vmatpush3.xpose.msk.msra.mxu1 %vm204_vm2, %v736_v61 }
 0x32d   :  { %2015 = vmatprep.mubr.msk.f32.mxu1 %vm2274_vm1, %v2273_v43  ;;  %2023 = vmatprep.subr.mxu1 %v2273_v43 }
 0x32e   :  { %2020 = vmatprep.mubr.msk.f32.mxu0 %vm2274_vm1, %v2273_v43 }
 0x32f   :  { %2016 = vmatmul.mubr.msk.f32.vlgmr.msra.gmra.mrb[10].mxu1 %vm204_vm2, %v2387_v54 }
 0x330   :  { %2025 = vmatprep.mubr.msk.f32.mxu1 %vm2274_vm1, %v2273_v43 }
 0x38c   :  { %v275_v62 = vpop.f32.mrb[2].mxu1 }
 0x38d   :  { %v811_v63 = vmul.f32 0.35355338, %v275_v62  ;;  %v1982_v2 = vpop.f32.mrb[3].mxu1 }
 0x38f   :  { %v819_v3 = vsel %vm204_vm2, %v811_v63, -inf }
 0x390   :  { %820 = vmax.xlane.f32.xlu0 %v819_v3 }
 0x393   :  { %v351_v4 = vpop.f32.mrb[4].mxu1 }
 0x394   :  { %v812_v5 = vmul.f32 0.35355338, %v351_v4  ;;  %v1987_v6 = vpop.f32.mrb[5].mxu1 }
 0x396   :  { %v822_v7 = vsel %vm204_vm2, %v812_v5, -inf }
 0x397   :  { %823 = vmax.xlane.f32.xlu1 %v822_v7 }
 0x3f6   :  { %v503_v8 = vpop.f32.mrb[6].mxu1 }
 0x3f7   :  { %v814_v9 = vmul.f32 0.35355338, %v503_v8  ;;  %v427_v10 = vpop.f32.mrb[0].mxu0  ;;  %v1997_v11 = vpop.f32.mrb[7].mxu1 }
 0x3f8   :  { %v1992_v12 = vpop.f32.mrb[1].mxu0  ;;  %v813_v13 = vmul.f32 0.35355338, %v427_v10 }
 0x3f9   :  { %v828_v14 = vsel %vm204_vm2, %v814_v9, -inf }
 0x3fa   :  { %829 = vmax.xlane.f32.xlu0 %v828_v14  ;;  %v825_v18 = vsel %vm204_vm2, %v813_v13, -inf }
 0x3fb   :  { %v579_v15 = vpop.f32.mrb[2].mxu0 }
 0x3fc   :  { %v2002_v16 = vpop.f32.mrb[3].mxu0  ;;  %v815_v17 = vmul.f32 0.35355338, %v579_v15 }
 0x3fe   :  { %v655_v19 = vpop.f32.mrb[8].mxu1  ;;  %826 = vmax.xlane.f32.xlu0 %v825_v18  ;;  %v831_v27 = vsel %vm204_vm2, %v815_v17, -inf }
 0x3ff   :  { %v816_v20 = vmul.f32 0.35355338, %v655_v19  ;;  %v2007_v21 = vpop.f32.mrb[9].mxu1  ;;  %v731_v22 = vpop.f32.mrb[4].mxu0 }
 0x400   :  { %v2012_v23 = vpop.f32.mrb[5].mxu0  ;;  %v817_v24 = vmul.f32 0.35355338, %v731_v22 }
 0x401   :  { %v834_v25 = vsel %vm204_vm2, %v816_v20, -inf }
 0x402   :  { %835 = vmax.xlane.f32.xlu1 %v834_v25  ;;  %v807_v28 = vpop.f32.mrb[10].mxu1  ;;  %832 = vmax.xlane.f32.xlu0 %v831_v27  ;;  %v837_v33 = vsel %vm204_vm2, %v817_v24, -inf }
 0x403   :  { %v818_v30 = vmul.f32 0.35355338, %v807_v28  ;;  %v2017_v31 = vpop.f32.mrb[11].mxu1 }
 0x405   :  { %v840_v32 = vsel %vm204_vm2, %v818_v30, -inf }
 0x406   :  { %841 = vmax.xlane.f32.xlu1 %v840_v32  ;;  %838 = vmax.xlane.f32.xlu0 %v837_v33 }
 0x417   :  { %983 = vrot.lane.b32.xlu1 %v2358_v45, %s2279_s9 }
 0x41b   :  { %1059 = vrot.lane.b32.xlu1 %v2373_v49, %s2279_s9 }
 0x41c   :  { %907 = vrot.lane.b32.xlu0 %v2360_v47, %s2279_s9 }
 0x41d   :  { %v821_v34 = vpop.xlane.xlu0 %820 }
 0x41e   :  { %v843_v35 = vsub.f32 %v811_v63, %v821_v34 }
 0x41f   :  { %1135 = vrot.lane.b32.xlu1 %v2370_v48, %s2279_s9 }
 0x420   :  { %1211 = vrot.lane.b32.xlu0 %v2376_v50, %s2279_s9  ;;  %v851_v36 = vmul.f32 1.442695, %v843_v35 }
 0x422   :  { %2157 = vpow2.f32 %v851_v36 }
 0x423   :  { %1287 = vrot.lane.b32.xlu1 %v2381_v52, %s2279_s9 }
 0x424   :  { %v824_v37 = vpop.xlane.xlu1 %823 }
 0x425   :  { %v844_v38 = vsub.f32 %v812_v5, %v824_v37 }
 0x427   :  { %v853_v39 = vmul.f32 1.442695, %v844_v38 }
 0x429   :  { %2159 = vpow2.f32 %v853_v39 }
 0x42c   :  { %v2456_v40 = vpop.eup %2157 }
 0x42d   :  { %v867_v41 = vsel %vm204_vm2, %v2456_v40, 0.0 }
 0x433   :  { %v2460_v42 = vpop.eup %2159 }
 0x434   :  { %v870_v44 = vsel %vm204_vm2, %v2460_v42, 0.0 }
 0x43f   :  { %868 = vadd.xlane.f32.xlu0 %v867_v41 }
 0x447   :  { %871 = vadd.xlane.f32.xlu1 %v870_v44 }
 0x487   :  { %v830_v45 = vpop.xlane.xlu0 %829 }
 0x488   :  { %v846_v46 = vsub.f32 %v814_v9, %v830_v45 }
 0x48a   :  { %v857_v47 = vmul.f32 1.442695, %v846_v46 }
 0x48b   :  { %v827_v48 = vpop.xlane.xlu0 %826 }
 0x48c   :  { %2161 = vpow2.f32 %v857_v47  ;;  %v845_v49 = vsub.f32 %v813_v13, %v827_v48 }
 0x48e   :  { %v855_v50 = vmul.f32 1.442695, %v845_v49 }
 0x48f   :  { %v836_v52 = vpop.xlane.xlu1 %835  ;;  %v833_v53 = vpop.xlane.xlu0 %832 }
 0x490   :  { %2163 = vpow2.f32 %v855_v50  ;;  %v848_v55 = vsub.f32 %v816_v20, %v836_v52  ;;  %v847_v56 = vsub.f32 %v815_v17, %v833_v53  ;;  %v46_v53 = vld [vmem:[#allocation5 + $0x20] sm:$0xff] }
 0x492   :  { %v861_v57 = vmul.f32 1.442695, %v848_v55  ;;  %v859_v58 = vmul.f32 1.442695, %v847_v56  ;;  %v47_v55 = vld [vmem:[#allocation5 + $0x28] sm:$0xff] }
 0x493   :  { %v842_v59 = vpop.xlane.xlu1 %841  ;;  %v839_v60 = vpop.xlane.xlu0 %838  ;;  %v2107_v56 = vpack.c.bf16 %v47_v55, %v46_v53  ;;  %v1662_v53 = vsub.s32 3, %v2340_v26  ;;  %v1668_v55 = vsub.s32 4, %v2340_v26 }
 0x494   :  { %2165 = vpow2.f32 %v861_v57  ;;  %v850_v61 = vsub.f32 %v818_v30, %v842_v59  ;;  %v849_v62 = vsub.f32 %v817_v24, %v839_v60  ;;  %v48_v57 = vld [vmem:[#allocation5 + $0x30] sm:$0xff] }
 0x495   :  { %2167 = vpow2.f32 %v859_v58  ;;  %v49_v58 = vld [vmem:[#allocation5 + $0x38] sm:$0xff] }
 0x496   :  { %v2162_v63 = vpop.eup %2161  ;;  %v865_v2 = vmul.f32 1.442695, %v850_v61  ;;  %v863_v3 = vmul.f32 1.442695, %v849_v62  ;;  %v2111_v59 = vpack.c.bf16 %v49_v58, %v48_v57 }
 0x497   :  { %v984_v4 = vpop.permute.xlu1 %983  ;;  %v908_v5 = vpop.permute.xlu0 %907  ;;  %v876_v6 = vsel %vm204_vm2, %v2162_v63, 0.0 }
 0x498   :  { %2169 = vpow2.f32 %v865_v2  ;;  %2024 = vmatpush3.msra.mxu1 %v984_v4  ;;  %877 = vadd.xlane.f32.xlu1 %v876_v6 }
 0x499   :  { %2171 = vpow2.f32 %v863_v3  ;;  %2019 = vmatpush3.msra.mxu0 %v908_v5  ;;  %2033 = vmatprep.subr.mxu1 %v2273_v43 }
 0x49a   :  { %v2164_v7 = vpop.eup %2163  ;;  %2028 = vmatprep.subr.mxu0 %v2273_v43 }
 0x49b   :  { %v873_v8 = vsel %vm204_vm2, %v2164_v7, 0.0  ;;  %v1060_v17 = vpop.permute.xlu1 %1059  ;;  %v1212_v18 = vpop.permute.xlu0 %1211 }
 0x49c   :  { %874 = vadd.xlane.f32.xlu0 %v873_v8 }
 0x49e   :  { %v2166_v9 = vpop.eup %2165 }
 0x49f   :  { %v2168_v10 = vpop.eup %2167  ;;  %v882_v11 = vsel %vm204_vm2, %v2166_v9, 0.0  ;;  %v1136_v19 = vpop.permute.xlu1 %1135 }
 0x4a0   :  { %883 = vadd.xlane.f32.xlu1 %v882_v11  ;;  %v879_v12 = vsel %vm204_vm2, %v2168_v10, 0.0 }
 0x4a1   :  { %880 = vadd.xlane.f32.xlu0 %v879_v12 }
 0x4a2   :  { %v2470_v13 = vpop.eup %2169 }
 0x4a3   :  { %v2472_v14 = vpop.eup %2171  ;;  %v888_v15 = vsel %vm204_vm2, %v2470_v13, 0.0  ;;  %v1288_v21 = vpop.permute.xlu1 %1287 }
 0x4a4   :  { %889 = vadd.xlane.f32.xlu1 %v888_v15  ;;  %v885_v16 = vsel %vm204_vm2, %v2472_v14, 0.0 }
 0x4a5   :  { %886 = vadd.xlane.f32.xlu0 %v885_v16 }
 0x4b5   :  { %1439 = vrot.lane.b32.xlu1 %v2387_v54, %s2279_s9 }
 0x4bb   :  { %1363 = vrot.lane.b32.xlu0 %v2378_v51, %s2279_s9 }
 0x4cc   :  { %v869_v20 = vpop.xlane.xlu0 %868 }
 0x4cd   :  { %2173 = vrcp.f32 %v869_v20 }
 0x4d4   :  { %v872_v22 = vpop.xlane.xlu1 %871 }
 0x4d5   :  { %2175 = vrcp.f32 %v872_v22 }
 0x4d7   :  { %v2174_v23 = vpop.eup %2173 }
 0x4d8   :  { %v899_v24 = vmul.f32 %v2174_v23, %v2456_v40 }
 0x4da   :  { %2021 = vmatmul.mubr.msk.f32.vlgmr.msra.gmra.mrb[6].mxu0 %vm204_vm2, %v899_v24 }
 0x4db   :  { %2029 = vmatpush3.msra.mxu0 %v1060_v17  ;;  %2030 = vmatprep.mubr.msk.f32.mxu0 %vm2274_vm1, %v2273_v43 }
 0x4dc   :  { %2038 = vmatprep.subr.mxu0 %v2273_v43 }
 0x4df   :  { %v2176_v51 = vpop.eup %2175 }
 0x4e0   :  { %v900_v54 = vmul.f32 %v2176_v51, %v2460_v42 }
 0x4e2   :  { %2026 = vmatmul.mubr.msk.f32.vlgmr.msra.gmra.mrb[12].mxu1 %vm204_vm2, %v900_v54 }
 0x4e3   :  { %2034 = vmatpush3.msra.mxu1 %v1136_v19  ;;  %2035 = vmatprep.mubr.msk.f32.mxu1 %vm2274_vm1, %v2273_v43 }
 0x4e4   :  { %2043 = vmatprep.subr.mxu1 %v2273_v43 }
 0x525   :  { %v878_v25 = vpop.xlane.xlu1 %877 }
 0x526   :  { %2177 = vrcp.f32 %v878_v25 }
 0x529   :  { %v875_v27 = vpop.xlane.xlu0 %874 }
 0x52a   :  { %2179 = vrcp.f32 %v875_v27 }
 0x52d   :  { %v884_v28 = vpop.xlane.xlu1 %883 }
 0x52e   :  { %2181 = vrcp.f32 %v884_v28  ;;  %v881_v30 = vpop.xlane.xlu0 %880 }
 0x52f   :  { %2183 = vrcp.f32 %v881_v30 }
 0x530   :  { %v2178_v31 = vpop.eup %2177 }
 0x531   :  { %v902_v32 = vmul.f32 %v2178_v31, %v2162_v63  ;;  %v890_v33 = vpop.xlane.xlu1 %889 }
 0x532   :  { %2185 = vrcp.f32 %v890_v33  ;;  %v887_v34 = vpop.xlane.xlu0 %886 }
 0x533   :  { %2187 = vrcp.f32 %v887_v34  ;;  %2036 = vmatmul.mubr.msk.f32.vlgmr.msra.gmra.mrb[14].mxu1 %vm204_vm2, %v902_v32 }
 0x534   :  { %v2180_v35 = vpop.eup %2179  ;;  %2044 = vmatpush3.msra.mxu1 %v1288_v21  ;;  %2045 = vmatprep.mubr.msk.f32.mxu1 %vm2274_vm1, %v2273_v43  ;;  %v1549_v21 = vsub.s32 2, %v2340_v26 }
 0x535   :  { %v901_v36 = vmul.f32 %v2180_v35, %v2164_v7  ;;  %2053 = vmatprep.subr.mxu1 %v2273_v43  ;;  %v1440_v41 = vpop.permute.xlu1 %1439 }
 0x536   :  { %v1364_v44 = vpop.permute.xlu0 %1363  ;;  %v1550_v22 = vrot.slane %v2343_v29, %v1549_v21 }
 0x537   :  { %2031 = vmatmul.mubr.msk.f32.vlgmr.msra.gmra.mrb[8].mxu0 %vm204_vm2, %v901_v36 }
 0x538   :  { %v2182_v37 = vpop.eup %2181  ;;  %2039 = vmatpush3.msra.mxu0 %v1212_v18  ;;  %2040 = vmatprep.mubr.msk.f32.mxu0 %vm2274_vm1, %v2273_v43 }
 0x539   :  { %v2184_v38 = vpop.eup %2183  ;;  %v904_v39 = vmul.f32 %v2182_v37, %v2166_v9  ;;  %2048 = vmatprep.subr.mxu0 %v2273_v43 }
 0x53a   :  { %v903_v40 = vmul.f32 %v2184_v38, %v2168_v10 }
 0x53b   :  { %2046 = vmatmul.mubr.msk.f32.vlgmr.msra.gmra.mrb[16].mxu1 %vm204_vm2, %v904_v39  ;;  %v50_v39 = vld [vmem:[#allocation5 + $0x40] sm:$0xff] }
 0x53c   :  { %v2186_v42 = vpop.eup %2185  ;;  %2041 = vmatmul.mubr.msk.f32.vlgmr.msra.gmra.mrb[10].mxu0 %vm204_vm2, %v903_v40  ;;  %2054 = vmatpush3.msra.mxu1 %v1440_v41  ;;  %v51_v40 = vld [vmem:[#allocation5 + $0x48] sm:$0xff] }
 0x53d   :  { %v2188_v45 = vpop.eup %2187  ;;  %v906_v46 = vmul.f32 %v2186_v42, %v2470_v13  ;;  %2049 = vmatpush3.msra.mxu0 %v1364_v44  ;;  %2050 = vmatprep.mubr.msk.f32.mxu0 %vm2274_vm1, %v2273_v43  ;;  %v2115_v41 = vpack.c.bf16 %v51_v40, %v50_v39  ;;  %v52_v42 = vld [vmem:[#allocation5 + $0x50] sm:$0xff]  ;;  %v53_v44 = vld [vmem:[#allocation5 + $0x58] sm:$0xff] }
 0x53e   :  { %v905_v47 = vmul.f32 %v2188_v45, %v2472_v14  ;;  %2055 = vmatprep.mubr.msk.f32.mxu1 %vm2274_vm1, %v2273_v43  ;;  %2108 = vmatprep.subr.bf16.mxu0 %v2107_v56  ;;  %v2119_v45 = vpack.c.bf16 %v53_v44, %v52_v42 }
 0x53f   :  { %2056 = vmatmul.mubr.msk.f32.vlgmr.msra.gmra.mrb[18].mxu1 %vm204_vm2, %v906_v46  ;;  %2116 = vmatprep.subr.bf16.mxu1 %v2115_v41 }
 0x540   :  { %2051 = vmatmul.mubr.msk.f32.vlgmr.msra.gmra.mrb[12].mxu0 %vm204_vm2, %v905_v47  ;;  %2118 = vmatpush3.bf16.msra.mxu1 %v2115_v41 }
 0x541   :  { %2110 = vmatpush3.bf16.msra.mxu0 %v2107_v56  ;;  %2120 = vmatprep.subr.bf16.mxu1 %v2119_v45  ;;  %v1663_v56 = vrot.slane %v2343_v29, %v1662_v53 }
 0x542   :  { %2112 = vmatprep.subr.bf16.mxu0 %v2111_v59 }
 0x544   :  { %2122 = vmatpush3.bf16.msra.mxu1 %v2119_v45 }
 0x545   :  { %2114 = vmatpush3.bf16.msra.mxu0 %v2111_v59  ;;  %v1669_v59 = vrot.slane %v2343_v29, %v1668_v55 }
 0x5ad   :  { %v979_v48 = vpop.f32.mrb[6].mxu0 }
 0x5ae   :  { %v2022_v49 = vpop.f32.mrb[7].mxu0 }
 0x5b5   :  { %v1055_v50 = vpop.f32.mrb[12].mxu1 }
 0x5b6   :  { %v2027_v52 = vpop.f32.mrb[13].mxu1 }
 0x606   :  { %v1207_v60 = vpop.f32.mrb[14].mxu1 }
 0x607   :  { %1519 = vrot.lane.b32.xlu1 %v1207_v60, %s2271_s20  ;;  %v2037_v43 = vpop.f32.mrb[15].mxu1 }
 0x60a   :  { %v1131_v61 = vpop.f32.mrb[8].mxu0 }
 0x60b   :  { %1517 = vrot.lane.b32.xlu0 %v1131_v61, %s2271_s20  ;;  %v2032_v62 = vpop.f32.mrb[9].mxu0 }
 0x60e   :  { %v1359_v63 = vpop.f32.mrb[16].mxu1 }
 0x60f   :  { %v1283_v2 = vpop.f32.mrb[10].mxu0  ;;  %1527 = vrot.lane.b32.xlu1 %v1359_v63, %s2280_s10  ;;  %v2047_v3 = vpop.f32.mrb[17].mxu1 }
 0x610   :  { %1525 = vrot.lane.b32.xlu0 %v1283_v2, %s2280_s10  ;;  %v2042_v4 = vpop.f32.mrb[11].mxu0  ;;  %v54_v3 = vld [vmem:[#allocation5 + $0x60] sm:$0xff] }
 0x611   :  { %v55_v4 = vld [vmem:[#allocation5 + $0x68] sm:$0xff] }
 0x612   :  { %v1511_v5 = vpop.f32.mrb[18].mxu1 }
 0x613   :  { %v1435_v6 = vpop.f32.mrb[12].mxu0  ;;  %1535 = vrot.lane.b32.xlu1 %v1511_v5, %s2281_s11  ;;  %v2057_v7 = vpop.f32.mrb[19].mxu1  ;;  %v2123_v5 = vpack.c.bf16 %v55_v4, %v54_v3 }
 0x614   :  { %1533 = vrot.lane.b32.xlu0 %v1435_v6, %s2281_s11  ;;  %v2052_v8 = vpop.f32.mrb[13].mxu0  ;;  %v56_v6 = vld [vmem:[#allocation5 + $0x70] sm:$0xff]  ;;  %v57_v7 = vld [vmem:[#allocation5 + $0x78] sm:$0xff] }
 0x615   :  { %2124 = vmatprep.subr.bf16.mxu0 %v2123_v5  ;;  %v2127_v8 = vpack.c.bf16 %v57_v7, %v56_v6 }
 0x679   :  { %v1520_v9 = vpop.permute.xlu1 %1519 }
 0x67a   :  { %v1540_v13 = vsel %vm204_vm2, %v1055_v50, %v1520_v9  ;;  %v58_v9 = vld [vmem:[#allocation5 + $0x80] sm:$0xff] }
 0x67d   :  { %v1518_v10 = vpop.permute.xlu0 %1517 }
 0x67e   :  { %v1539_v14 = vsel %vm204_vm2, %v979_v48, %v1518_v10  ;;  %v59_v10 = vld [vmem:[#allocation5 + $0x88] sm:$0xff] }
 0x681   :  { %v1528_v11 = vpop.permute.xlu1 %1527 }
 0x682   :  { %v1526_v12 = vpop.permute.xlu0 %1525  ;;  %v1543_v15 = vsel %vm1541_vm3, %v1540_v13, %v1528_v11  ;;  %v2131_v11 = vpack.c.bf16 %v59_v10, %v58_v9  ;;  %v61_v13 = vld [vmem:[#allocation5 + $0x98] sm:$0xff] }
 0x683   :  { %v1542_v17 = vsel %vm1541_vm3, %v1539_v14, %v1526_v12  ;;  %v60_v12 = vld [vmem:[#allocation5 + $0x90] sm:$0xff] }
 0x684   :  { %v2135_v14 = vpack.c.bf16 %v61_v13, %v60_v12 }
 0x685   :  { %v1536_v16 = vpop.permute.xlu1 %1535 }
 0x686   :  { %v1546_v18 = vsel %vm1544_vm4, %v1543_v15, %v1536_v16  ;;  %v1534_v19 = vpop.permute.xlu0 %1533  ;;  %v1674_v15 = vsub.s32 7, %v2340_v26 }
 0x687   :  { %v1545_v20 = vsel %vm1544_vm4, %v1542_v17, %v1534_v19 }
 0x688   :  { %2066 = vmatprep.mubr.msk.f32.mxu0 %vm63_vm0, %v1545_v20  ;;  %v1675_v16 = vrot.slane %v2343_v29, %v1674_v15 }
 0x689   :  { %2067 = vmatmul.mubr.msk.f32.vlgmr.msra.gmra.mrb[14].mxu0 %vm63_vm0, %v1546_v18 }
 0x68a   :  { %2126 = vmatpush3.bf16.msra.mxu0 %v2123_v5 }
 0x68b   :  { %2128 = vmatprep.subr.bf16.mxu0 %v2127_v8 }
 0x68e   :  { %2130 = vmatpush3.bf16.msra.mxu0 %v2127_v8 }
 0x68f   :  { %2132 = vmatprep.subr.bf16.mxu0 %v2131_v11 }
 0x692   :  { %2134 = vmatpush3.bf16.msra.mxu0 %v2131_v11 }
 0x693   :  { %2136 = vmatprep.subr.bf16.mxu0 %v2135_v14 }
 0x696   :  { %2138 = vmatpush3.bf16.msra.mxu0 %v2135_v14 }
 0x75c   :  { %v2068_v23 = vpop.f32.mrb[14].mxu0 }
 0x75d   :  { %v1629_v24 = vadd.f32 %v2068_v23, %v1550_v22  ;;  %v1623_v51 = vpop.f32.mrb[15].mxu0 }
 0x75e   :  { %v1624_v54 = vadd.f32 %v1623_v51, %v1550_v22 }
 0x75f   :  { %v2519_v25 = vadd.f32 %v1629_v24, %v2330_v1 }
 0x760   :  { %v2522_v27 = vadd.f32 %v1624_v54, %v2328_v0 }
 0x761   :  { %v1637_v28 = vsel %vm63_vm0, %v2519_v25, 0.0 }
 0x762   :  { %1638 = vadd.xlane.f32.xlu1 %v1637_v28  ;;  %v1634_v30 = vsel %vm63_vm0, %v2522_v27, 0.0 }
 0x763   :  { %1635 = vadd.xlane.f32.xlu0 %v1634_v30 }
 0x7ef   :  { %v1639_v31 = vpop.xlane.xlu1 %1638 }
 0x7f0   :  { %v1641_v32 = vmul.f32 0.03125, %v1639_v31  ;;  %v1636_v33 = vpop.xlane.xlu0 %1635 }
 0x7f1   :  { %v1640_v34 = vmul.f32 0.03125, %v1636_v33  ;;  %v1769_v33 = vsub.s32 5, %v2340_v26 }
 0x7f2   :  { %v1643_v35 = vsub.f32 %v2519_v25, %v1641_v32 }
 0x7f3   :  { %v1642_v1 = vsub.f32 %v2522_v27, %v1640_v34  ;;  %v1770_v34 = vrot.slane %v2343_v29, %v1769_v33 }
 0x7f4   :  { %v1645_v37 = vmul.f32 %v1643_v35, %v1643_v35 }
 0x7f5   :  { %v1644_v36 = vmul.f32 %v1642_v1, %v1642_v1 }
 0x7f6   :  { %v1649_v38 = vsel %vm63_vm0, %v1645_v37, 0.0 }
 0x7f7   :  { %v1646_v0 = vsel %vm63_vm0, %v1644_v36, 0.0 }
 0x7f8   :  { %1647 = vadd.xlane.f32.xlu0 %v1646_v0 }
 0x7fc   :  { %1650 = vadd.xlane.f32.xlu0 %v1649_v38 }
 0x885   :  { %v1648_v46 = vpop.xlane.xlu0 %1647 }
 0x886   :  { %v1652_v47 = vmul.f32 0.03125, %v1648_v46 }
 0x888   :  { %v1654_v48 = vadd.f32 1e-05, %v1652_v47 }
 0x889   :  { %v1651_v49 = vpop.xlane.xlu0 %1650 }
 0x88a   :  { %2189 = vrsqrt.f32 %v1654_v48  ;;  %v1653_v50 = vmul.f32 0.03125, %v1651_v49 }
 0x88c   :  { %v1655_v52 = vadd.f32 1e-05, %v1653_v50 }
 0x88e   :  { %2191 = vrsqrt.f32 %v1655_v52 }
 0x894   :  { %v2190_v57 = vpop.eup %2189 }
 0x895   :  { %v1658_v58 = vmul.f32 %v2190_v57, %v1642_v1 }
 0x897   :  { %v1664_v60 = vmul.f32 %v1663_v56, %v1658_v58 }
 0x898   :  { %v2192_v43 = vpop.eup %2191 }
 0x899   :  { %v1659_v61 = vmul.f32 %v2192_v43, %v1643_v35  ;;  %v1670_v62 = vadd.f32 %v1669_v59, %v1664_v60 }
 0x89b   :  { %v1665_v63 = vmul.f32 %v1663_v56, %v1659_v61  ;;  %2077 = vmatprep.mubr.msk.f32.mxu1 %vm63_vm0, %v1670_v62 }
 0x89d   :  { %v1671_v2 = vadd.f32 %v1669_v59, %v1665_v63 }
 0x89f   :  { %2078 = vmatmul.mubr.msk.f32.vlgmr.msra.gmra.mrb[20].mxu1 %vm63_vm0, %v1671_v2 }
 0x972   :  { %v2079_v17 = vpop.f32.mrb[20].mxu1 }
 0x973   :  { %v1754_v18 = vadd.f32 %v2079_v17, %v1675_v16  ;;  %v1748_v19 = vpop.f32.mrb[21].mxu1 }
 0x974   :  { %v1749_v20 = vadd.f32 %v1748_v19, %v1675_v16 }
 0x975   :  { %v1760_v21 = vmul.f32 0.70710677, %v1754_v18  ;;  %v1758_v30 = vmul.f32 0.5, %v1754_v18 }
 0x976   :  { %v1759_v22 = vmul.f32 0.70710677, %v1749_v20  ;;  %v1757_v54 = vmul.f32 0.5, %v1749_v20 }
 0x977   :  { %2193 = verf.f32 %v1760_v21 }
 0x978   :  { %2195 = verf.f32 %v1759_v22 }
 0x981   :  { %v2194_v23 = vpop.eup %2193 }
 0x982   :  { %v2196_v24 = vpop.eup %2195  ;;  %v1764_v51 = vadd.f32 1.0, %v2194_v23 }
 0x983   :  { %v1763_v28 = vadd.f32 1.0, %v2196_v24 }
 0x984   :  { %v1766_v32 = vmul.f32 %v1764_v51, %v1758_v30 }
 0x985   :  { %v1765_v31 = vmul.f32 %v1763_v28, %v1757_v54 }
 0x987   :  { %2096 = vmatprep.mubr.msk.f32.mxu0 %vm1771_vm5, %v1765_v31 }
 0x988   :  { %2097 = vmatmul.mubr.msk.f32.vlgmr.msra.gmra.mrb[16].mxu0 %vm1771_vm5, %v1766_v32 }
 0xa5b   :  { %v2098_v35 = vpop.f32.mrb[16].mxu0 }
 0xa5c   :  { %v1850_v1 = vadd.f32 %v2098_v35, %v1770_v34  ;;  %v1844_v36 = vpop.f32.mrb[17].mxu0 }
 0xa5d   :  { %v1845_v0 = vadd.f32 %v1844_v36, %v1770_v34 }
 0xa5e   :  { %v1854_v37 = vadd.f32 %v1850_v1, %v2519_v25 }
 0xa5f   :  { %v1853_v38 = vadd.f32 %v1845_v0, %v2522_v27 }
 0xa60   :  { %1856 = vst.msk [vmem:[#allocation7 + $0x8] sm:$0xff] %vm63_vm0, %v1854_v37 }
 0xa61   :  { %1855 = vst.msk [vmem:[#allocation7] sm:$0xff] %vm63_vm0, %v1853_v38 }
 0xa62   :  { %2252 = shalt.err (!%p2249_p6)
}
 0xa63   :  { %s2253_s17 = scalar_lea.hbm %s2563_s2, 256 }
 0xa64   :  { %p2254_p7 = scmp.ne.s32.totalorder %s2563_s2, %s2253_s17  ;;  %p2257_p8 = scmp.lt.u32.totalorder %s2253_s17, %s2563_s2 }
 0xa66   :  { %p2259_p9 = pnand %p2257_p8, %p2254_p7 }
 0xa68   :  { %2262 = shalt.err (!%p2259_p9)
}
 0xa69   :  { %1868 = dma.vmem_to_hbm [thread:$0]  %s1863_s13, 256, %s2563_s2, [#allocation4], %s2270_s19, %s2270_s19, %s2271_s20  }
 0xa6a   :  { %2267 = dma.done.wait [#allocation4], 256  }
 0xa6b   :  { %2268 = vsyncadd [#allocation4], 4294967040 }
 0xa6c   :  { %1872 = vsyncpa [#allocation3], 1 }
 0xa6d   :  { %1873 = vsyncpa [#allocation6], 1 }
 0xa6e   :  { %1874 = vsyncpa [#allocation4], 1 }

</bundles_post_ra>
